<compile_context>
chip_gen: v7x
topology: tpu7x:2x2x1
jax: 0.10.0
libtpu: 0.0.40
codegen_flags: <defaults>
</compile_context>

<pallas_src>
import functools
import math

import jax
import jax.numpy as jnp
from jax import lax
from jax.experimental import pallas as pl
from jax.experimental.pallas import tpu as pltpu


def _round_up(x, mult):
    return ((x + mult - 1) // mult) * mult


def _round_lane(d, align):
    # Small dims only need 128 (lane width); big dims align to the MXU size.
    return _round_up(d, 128) if d <= 128 else _round_up(d, align)


def _gelu_exact(x):
    # PyTorch nn.GELU() default = exact erf formulation (kept in f32).
    return 0.5 * x * (1.0 + lax.erf(x * (1.0 / math.sqrt(2.0))))


def _tpu_plan():
    """Generation-aware sizing knobs (robust fallbacks if queries fail)."""
    kind = ""
    try:
        kind = jax.devices()[0].device_kind.lower()
    except Exception:
        pass
    vmem_cap = None
    try:
        vmem_cap = int(pltpu.get_tpu_info().vmem_capacity_bytes)
    except Exception:
        pass
    is_v7 = "v7" in kind
    is_v5 = "v5" in kind
    if vmem_cap is None:
        vmem_cap = (64 << 20) if is_v7 else (128 << 20)
    return dict(
        vmem_budget=int(vmem_cap * 0.75),   # headroom for Mosaic internal scratch
        align=128 if is_v5 else 256,        # MXU: 4x128^2 (v5e) vs 2x256^2 (v6e/v7x)
        two_cores=is_v7,                    # v7x: 2 TensorCores / chip
        tile_m_cap=512 if is_v7 else 1024,  # per-chip roofline balance points
    )


def _vmem_bytes(tile_m, chunk_h, tile_n, d_in_p, in_bytes, out_bytes):
    return (2 * tile_m * d_in_p * in_bytes      # x tiles (double-buffered)
            + 2 * d_in_p * chunk_h * in_bytes   # w1 chunks
            + 2 * chunk_h * tile_n * in_bytes   # w2 chunks
            + 2 * chunk_h * 4 + 2 * tile_n * 4  # f32 bias blocks
            + 2 * tile_m * tile_n * out_bytes   # out tiles
            + tile_m * tile_n * 4               # f32 accumulator scratch
            + 2 * tile_m * chunk_h * 4)         # fc1 intermediate headroom


def _pad2(a, p0, p1):
    if p0 == 0 and p1 == 0:
        return a
    return jnp.pad(a, ((0, p0), (0, p1)))


# ---------------------------------------------------------------------------
# Kernel: grid = (row tiles i, out-col tiles j, hidden chunks k), k innermost.
# ---------------------------------------------------------------------------
def mlp_kernel(x_ref, w1_ref, b1_ref, w2_ref, b2_ref, o_ref, acc_ref):
    k = pl.program_id(2)

    @pl.when(k == 0)
    def _():
        acc_ref[...] = jnp.zeros_like(acc_ref)

    # fc1 for this hidden chunk (full contraction over d_in, f32 accumulate).
    h = jnp.dot(x_ref[...], w1_ref[...], preferred_element_type=jnp.float32)
    h = _gelu_exact(h + b1_ref[...])        # exact erf GELU, matches nn.GELU()
    # drop1 / norm(Identity) / drop2: identity (eval mode, drop=0.0).

    # fc2 partial product for this (hidden chunk, out-col tile), f32 accumulate.
    acc_ref[...] += jnp.dot(h.astype(w2_ref.dtype), w2_ref[...],
                            preferred_element_type=jnp.float32)

    @pl.when(k == pl.num_programs(2) - 1)
    def _():
        o_ref[...] = (acc_ref[...] + b2_ref[...]).astype(o_ref.dtype)


# ---------------------------------------------------------------------------
# One-time parameter preparation (pad + cast OUTSIDE the jitted forward).
# ---------------------------------------------------------------------------
def prepare_mlp_params(w1_t, b1, w2_t, b2, *, chunk_h=None, tile_n=None,
                       use_bf16=True):
    """w1_t: (D_in, D_hid); b1: (1, D_hid) or (D_hid,);
    w2_t: (D_hid, D_out); b2: (1, D_out) or (D_out,)."""
    plan = _tpu_plan()
    align = plan["align"]

    d_in, d_hid = w1_t.shape
    d_out = w2_t.shape[1]

    d_in_p = _round_lane(d_in, align)
    d_out_p = _round_lane(d_out, align)

    if chunk_h is None:
        chunk_h = min(1024, _round_lane(d_hid, align))
    chunk_h = max(128, _round_up(int(chunk_h), 128))

    if tile_n is None:
        tile_n = d_out_p
    tile_n = min(d_out_p, max(128, _round_up(int(tile_n), 128)))
    while d_out_p % tile_n:
        tile_n -= 128                      # terminates: d_out_p % 128 == 0

    in_dtype = jnp.bfloat16 if use_bf16 else w1_t.dtype
    in_bytes = jnp.dtype(in_dtype).itemsize
    budget = plan["vmem_budget"]
    tile_m_cap = plan["tile_m_cap"]

    # Fit the worst-case (tile_m = cap) footprint into the VMEM budget.
    # Shrink tile_n first (keeps tile_m big / kernel MXU-bound), then chunk_h,
    # then the tile_m cap itself.
    def _fits(tm, ch, tn):
        return _vmem_bytes(tm, ch, tn, d_in_p, in_bytes, 4) * 1.3 <= budget

    while not _fits(tile_m_cap, chunk_h, tile_n):
        if (tile_n > 1024 and (tile_n // 2) % 128 == 0
                and d_out_p % (tile_n // 2) == 0):
            tile_n //= 2
        elif chunk_h > 512 and (chunk_h // 2) % 128 == 0:
            chunk_h //= 2
        elif tile_m_cap > 256:
            tile_m_cap //= 2
        elif (tile_n > 128 and (tile_n // 2) % 128 == 0
                and d_out_p % (tile_n // 2) == 0):
            tile_n //= 2
        else:
            break

    d_hid_p = _round_up(d_hid, chunk_h)

    b1 = jnp.asarray(b1).reshape(1, -1)
    b2 = jnp.asarray(b2).reshape(1, -1)
    w1p = _pad2(w1_t, d_in_p - d_in, d_hid_p - d_hid).astype(in_dtype)
    w2p = _pad2(w2_t, d_hid_p - d_hid, d_out_p - d_out).astype(in_dtype)
    b1p = _pad2(b1, 0, d_hid_p - d_hid).astype(jnp.float32)
    b2p = _pad2(b2, 0, d_out_p - d_out).astype(jnp.float32)

    config = dict(d_in=d_in, d_out=d_out, d_in_p=d_in_p,
                  chunk_h=chunk_h, tile_n=tile_n, tile_m_cap=tile_m_cap,
                  two_cores=plan["two_cores"], vmem_budget=budget)
    return dict(w1=w1p, b1=b1p, w2=w2p, b2=b2p, config=config)


# ---------------------------------------------------------------------------
# Forward pass.
# ---------------------------------------------------------------------------
@functools.partial(jax.jit, static_argnames=("tile_m", "chunk_h", "tile_n",
                                             "d_in_p", "d_out", "vmem_limit"))
def _mlp_call(x2d, w1p, b1p, w2p, b2p, *, tile_m, chunk_h, tile_n,
              d_in_p, d_out, vmem_limit):
    m, d_in = x2d.shape
    out_dtype = x2d.dtype
    m_p = _round_up(m, tile_m)
    d_hid_p = w1p.shape[1]
    d_out_p = w2p.shape[1]

    xp = x2d if (m_p == m and d_in_p == d_in) else jnp.pad(
        x2d, ((0, m_p - m), (0, d_in_p - d_in)))
    xp = xp.astype(w1p.dtype)

    grid = (m_p // tile_m, d_out_p // tile_n, d_hid_p // chunk_h)

    out2d = pl.pallas_call(
        mlp_kernel,
        out_shape=jax.ShapeDtypeStruct((m_p, d_out_p), out_dtype),
        grid_spec=pltpu.PrefetchScalarGridSpec(
            num_scalar_prefetch=0,
            grid=grid,
            in_specs=[
                pl.BlockSpec((tile_m, d_in_p), lambda i, j, k: (i, 0)),   # x
                pl.BlockSpec((d_in_p, chunk_h), lambda i, j, k: (0, k)),  # w1
                pl.BlockSpec((1, chunk_h), lambda i, j, k: (0, k)),       # b1
                pl.BlockSpec((chunk_h, tile_n), lambda i, j, k: (k, j)),  # w2
                pl.BlockSpec((1, tile_n), lambda i, j, k: (0, j)),        # b2
            ],
            out_specs=pl.BlockSpec((tile_m, tile_n), lambda i, j, k: (i, j)),
            scratch_shapes=[pltpu.VMEM((tile_m, tile_n), jnp.float32)],
        ),
        compiler_params=pltpu.CompilerParams(
            dimension_semantics=("parallel", "parallel", "arbitrary"),
            vmem_limit_bytes=vmem_limit,
        ),
    )(xp, w1p, b1p, w2p, b2p)

    return out2d[:m, :d_out]


def mlp_pallas(x, params):
    """x: (..., D_in); params from prepare_mlp_params()."""
    cfg = params["config"]
    d_in, d_out = cfg["d_in"], cfg["d_out"]
    orig_shape = x.shape
    x2d = x.reshape(-1, d_in)
    m = x2d.shape[0]
    m8 = _round_up(max(m, 1), 8)

    tile_m = min(cfg["tile_m_cap"], m8)
    # Only split small-M row tiles on v7x, where the parallel i axis feeds the
    # second TensorCore; on v5e/v6e it just re-streams the weights twice.
    if cfg["two_cores"] and m8 // tile_m < 2 and m8 >= 16:
        tile_m = _round_up((m8 + 1) // 2, 8)
    tile_m = max(8, (int(tile_m) // 8) * 8)

    est = _vmem_bytes(tile_m, cfg["chunk_h"], cfg["tile_n"], cfg["d_in_p"],
                      params["w1"].dtype.itemsize, x.dtype.itemsize)
    vmem_limit = int(min(cfg["vmem_budget"], max(32 << 20, int(est * 1.4))))

    out2d = _mlp_call(x2d, params["w1"], params["b1"], params["w2"],
                      params["b2"],
                      tile_m=tile_m, chunk_h=cfg["chunk_h"],
                      tile_n=cfg["tile_n"], d_in_p=cfg["d_in_p"],
                      d_out=d_out, vmem_limit=vmem_limit)
    return out2d.reshape(*orig_shape[:-1], d_out)


# ---------------------------------------------------------------------------
# Init / reference / demo.
# ---------------------------------------------------------------------------
def init_mlp_params(key, in_features, hidden_features, out_features,
                    dtype=jnp.float32):
    """Deterministic init mimicking nn.Linear's uniform bounds."""
    k1, k2, k3, k4 = jax.random.split(key, 4)
    bound1 = 1.0 / math.sqrt(in_features)
    bound2 = 1.0 / math.sqrt(hidden_features)
    # PyTorch weight is (out, in); we store the transpose (in, out) directly.
    w1_t = jax.random.uniform(k1, (in_features, hidden_features), dtype,
                              -bound1, bound1)
    b1 = jax.random.uniform(k2, (1, hidden_features), dtype, -bound1, bound1)
    w2_t = jax.random.uniform(k3, (hidden_features, out_features), dtype,
                              -bound2, bound2)
    b2 = jax.random.uniform(k4, (1, out_features), dtype, -bound2, bound2)
    return w1_t, b1, w2_t, b2


def mlp_ref(x, w1_t, b1, w2_t, b2, use_bf16=True):
    """Pure-JAX reference doing the same bf16-operand / f32-accumulate math."""
    dt = jnp.bfloat16 if use_bf16 else x.dtype
    h = jnp.dot(x.astype(dt), w1_t.astype(dt),
                preferred_element_type=jnp.float32)
    h = _gelu_exact(h + b1[0].astype(jnp.float32))
    out = jnp.dot(h.astype(dt), w2_t.astype(dt),
                  preferred_element_type=jnp.float32)
    return (out + b2[0].astype(jnp.float32)).astype(x.dtype)


if __name__ == "__main__":
    # Small shapes: batch=2, seq=8, in_features=32, hidden=256, out=32.
    B, S, D_IN, D_HID, D_OUT = 2, 8, 32, 256, 32

    key = jax.random.PRNGKey(0)
    kx, kp = jax.random.split(key)
    x = jax.random.normal(kx, (B, S, D_IN), jnp.float32)
    w1_t, b1, w2_t, b2 = init_mlp_params(kp, D_IN, D_HID, D_OUT)

    # chunk_h=128 -> 2 hidden chunks, so the k-axis accumulator path (init /
    # accumulate / finalize) is exercised even at demo size.
    params = prepare_mlp_params(w1_t, b1, w2_t, b2, chunk_h=128)

    out = mlp_pallas(x, params)
    out = jax.block_until_ready(out)

    ref = mlp_ref(x, w1_t, b1, w2_t, b2, use_bf16=True)
    assert out.shape == (B, S, D_OUT)
    max_err = float(jnp.max(jnp.abs(out - ref)))
    assert jnp.allclose(out, ref, atol=5e-3, rtol=5e-3), f"mismatch: {max_err}"

    # TODO(synk): dropout with p>0 in training mode would need pltpu.prng_*;
    # default drop=0.0 / eval mode makes it an identity here.
    print("KERNEL_OK")
</pallas_src>

<mosaic_0001>
module attributes {stable_mosaic.version = 11 : i64} {
  func.func @mlp_kernel(%arg0: i32, %arg1: i32, %arg2: i32, %arg3: memref<16x128xbf16, #tpu.memory_space<vmem>>, %arg4: memref<128x128xbf16, #tpu.memory_space<vmem>>, %arg5: memref<1x128xf32, #tpu.memory_space<vmem>>, %arg6: memref<128x128xbf16, #tpu.memory_space<vmem>>, %arg7: memref<1x128xf32, #tpu.memory_space<vmem>>, %arg8: memref<16x128xf32, #tpu.memory_space<vmem>>, %arg9: memref<16x128xf32, #tpu.memory_space<vmem>>) attributes {dimension_semantics = [#tpu.dimension_semantics<parallel>, #tpu.dimension_semantics<parallel>, #tpu.dimension_semantics<arbitrary>], iteration_bounds = array<i64: 1, 1, 2>, scalar_prefetch = 0 : i64, scratch_operands = 1 : i64, tpu.core_type = #tpu.core_type<tc>, window_params = [{transform_indices = @transform_0, window_bounds = array<i64: 16, 128>}, {transform_indices = @transform_1, window_bounds = array<i64: 128, 128>}, {transform_indices = @transform_2, window_bounds = array<i64: 1, 128>}, {transform_indices = @transform_3, window_bounds = array<i64: 128, 128>}, {transform_indices = @transform_4, window_bounds = array<i64: 1, 128>}, {transform_indices = @transform_5, window_bounds = array<i64: 16, 128>}]} {
    %c0_i32 = arith.constant 0 : i32
    %0 = arith.cmpi eq, %arg2, %c0_i32 : i32
    %1 = arith.extui %0 : i1 to i32
    %c0_i32_0 = arith.constant 0 : i32
    %2 = arith.cmpi ne, %1, %c0_i32_0 : i32
    scf.if %2 {
      %cst_17 = arith.constant 0.000000e+00 : f32
      %26 = vector.broadcast %cst_17 : f32 to vector<16x128xf32>
      %c0_18 = arith.constant 0 : index
      %c0_19 = arith.constant 0 : index
      %27 = vector.load %arg9[%c0_18, %c0_19] : memref<16x128xf32, #tpu.memory_space<vmem>>, vector<16x128xf32>
      tpu.vector_store %arg9[%c0_18, %c0_19], %26 {strides = array<i32>} : memref<16x128xf32, #tpu.memory_space<vmem>>, vector<16x128xf32>,
    } else {
    }
    %c0 = arith.constant 0 : index
    %c0_1 = arith.constant 0 : index
    %3 = vector.load %arg3[%c0, %c0_1] : memref<16x128xbf16, #tpu.memory_space<vmem>>, vector<16x128xbf16>
    %c0_2 = arith.constant 0 : index
    %c0_3 = arith.constant 0 : index
    %4 = vector.load %arg4[%c0_2, %c0_3] : memref<128x128xbf16, #tpu.memory_space<vmem>>, vector<128x128xbf16>
    %cst = arith.constant dense<0.000000e+00> : vector<16x128xf32>
    %5 = tpu.matmul %3, %4, %cst {dimension_numbers = #tpu.dot_dimension_numbers<[1], [0], [0], [1], [0, 0, 1, 1], [], []>} : vector<16x128xbf16>, vector<128x128xbf16>, vector<16x128xf32> -> vector<16x128xf32>
    %c0_4 = arith.constant 0 : index
    %c0_5 = arith.constant 0 : index
    %6 = vector.load %arg5[%c0_4, %c0_5] : memref<1x128xf32, #tpu.memory_space<vmem>>, vector<1x128xf32>
    %7 = vector.broadcast %6 : vector<1x128xf32> to vector<16x128xf32>
    %8 = arith.addf %5, %7 : vector<16x128xf32>
    %cst_6 = arith.constant 5.000000e-01 : f32
    %9 = vector.broadcast %cst_6 : f32 to vector<16x128xf32>
    %10 = arith.mulf %9, %8 : vector<16x128xf32>
    %cst_7 = arith.constant 0.707106769 : f32
    %11 = vector.broadcast %cst_7 : f32 to vector<16x128xf32>
    %12 = arith.mulf %8, %11 : vector<16x128xf32>
    %13 = math.erf %12 : vector<16x128xf32>
    %cst_8 = arith.constant 1.000000e+00 : f32
    %14 = vector.broadcast %cst_8 : f32 to vector<16x128xf32>
    %15 = arith.addf %14, %13 : vector<16x128xf32>
    %16 = arith.mulf %10, %15 : vector<16x128xf32>
    %c0_9 = arith.constant 0 : index
    %c0_10 = arith.constant 0 : index
    %17 = vector.load %arg9[%c0_9, %c0_10] : memref<16x128xf32, #tpu.memory_space<vmem>>, vector<16x128xf32>
    %18 = arith.truncf %16 : vector<16x128xf32> to vector<16x128xbf16>
    %c0_11 = arith.constant 0 : index
    %c0_12 = arith.constant 0 : index
    %19 = vector.load %arg6[%c0_11, %c0_12] : memref<128x128xbf16, #tpu.memory_space<vmem>>, vector<128x128xbf16>
    %cst_13 = arith.constant dense<0.000000e+00> : vector<16x128xf32>
    %20 = tpu.matmul %18, %19, %cst_13 {dimension_numbers = #tpu.dot_dimension_numbers<[1], [0], [0], [1], [0, 0, 1, 1], [], []>} : vector<16x128xbf16>, vector<128x128xbf16>, vector<16x128xf32> -> vector<16x128xf32>
    %21 = arith.addf %17, %20 : vector<16x128xf32>
    %c0_14 = arith.constant 0 : index
    %c0_15 = arith.constant 0 : index
    %22 = vector.load %arg9[%c0_14, %c0_15] : memref<16x128xf32, #tpu.memory_space<vmem>>, vector<16x128xf32>
    tpu.vector_store %arg9[%c0_14, %c0_15], %21 {strides = array<i32>} : memref<16x128xf32, #tpu.memory_space<vmem>>, vector<16x128xf32>,
    %c1_i32 = arith.constant 1 : i32
    %23 = arith.cmpi eq, %arg2, %c1_i32 : i32
    %24 = arith.extui %23 : i1 to i32
    %c0_i32_16 = arith.constant 0 : i32
    %25 = arith.cmpi ne, %24, %c0_i32_16 : i32
    scf.if %25 {
      %c0_17 = arith.constant 0 : index
      %c0_18 = arith.constant 0 : index
      %26 = vector.load %arg9[%c0_17, %c0_18] : memref<16x128xf32, #tpu.memory_space<vmem>>, vector<16x128xf32>
      %c0_19 = arith.constant 0 : index
      %c0_20 = arith.constant 0 : index
      %27 = vector.load %arg7[%c0_19, %c0_20] : memref<1x128xf32, #tpu.memory_space<vmem>>, vector<1x128xf32>
      %28 = vector.broadcast %27 : vector<1x128xf32> to vector<16x128xf32>
      %29 = arith.addf %26, %28 : vector<16x128xf32>
      %c0_21 = arith.constant 0 : index
      %c0_22 = arith.constant 0 : index
      %30 = vector.load %arg8[%c0_21, %c0_22] : memref<16x128xf32, #tpu.memory_space<vmem>>, vector<16x128xf32>
      tpu.vector_store %arg8[%c0_21, %c0_22], %29 {strides = array<i32>} : memref<16x128xf32, #tpu.memory_space<vmem>>, vector<16x128xf32>,
    } else {
    }
    return
  }
  func.func @transform_0(%arg0: i32, %arg1: i32, %arg2: i32) -> (i32, i32) {
    %c0_i32 = arith.constant 0 : i32
    %c0_i32_0 = arith.constant 0 : i32
    return %arg0, %c0_i32 : i32, i32
  }
  func.func @transform_1(%arg0: i32, %arg1: i32, %arg2: i32) -> (i32, i32) {
    %c0_i32 = arith.constant 0 : i32
    %c0_i32_0 = arith.constant 0 : i32
    return %c0_i32, %arg2 : i32, i32
  }
  func.func @transform_2(%arg0: i32, %arg1: i32, %arg2: i32) -> (i32, i32) {
    %c0_i32 = arith.constant 0 : i32
    %c0_i32_0 = arith.constant 0 : i32
    return %c0_i32, %arg2 : i32, i32
  }
  func.func @transform_3(%arg0: i32, %arg1: i32, %arg2: i32) -> (i32, i32) {
    %c0_i32 = arith.constant 0 : i32
    return %arg2, %arg1 : i32, i32
  }
  func.func @transform_4(%arg0: i32, %arg1: i32, %arg2: i32) -> (i32, i32) {
    %c0_i32 = arith.constant 0 : i32
    %c0_i32_0 = arith.constant 0 : i32
    return %c0_i32, %arg1 : i32, i32
  }
  func.func @transform_5(%arg0: i32, %arg1: i32, %arg2: i32) -> (i32, i32) {
    %c0_i32 = arith.constant 0 : i32
    return %arg0, %arg1 : i32, i32
  }
}

</mosaic_0001>

<bundles_post_ra>
// kernel: _mlp_call.1
= control target key start
LH: loop header
LB: loop body
LE: loop exit
PB: predicated region body
PF: predicated region fallthrough
CT: control target
= control target key end

     0   :  { %10 = vsyncpa [#allocation4], 0  ;;  %s1385_s0 = inlined_call_operand.vmem [shape: bf16[16,128], index: 0, kind: input, shape index: {}]   ;;  %s1386_s1 = inlined_call_operand.hbm [shape: bf16[128,256], index: 1, kind: input, shape index: {}]   ;;  %s1387_s2 = inlined_call_operand.vmem [shape: f32[1,256], index: 2, kind: input, shape index: {}]   ;;  %s1388_s3 = inlined_call_operand.hbm [shape: bf16[256,128], index: 3, kind: input, shape index: {}]   ;;  %s1389_s4 = inlined_call_operand.vmem [shape: f32[1,128], index: 4, kind: input, shape index: {}]   ;;  %s1390_s5 = inlined_call_operand.hbm [shape: f32[16,128], index: 5, kind: output, shape index: {}]  }
   0x1   :  { %12 = vsyncpa [#allocation4 + $0x1], 0 }
   0x2   :  { %13 = vsyncpa [#allocation7], 0 }
   0x3   :  { %15 = vsyncpa [#allocation7 + $0x1], 0 }
   0x4   :  { %16 = vsyncpa [#allocation5], 0  ;;  %s1137_s18 = smov 0   ;;  %s1139_s19 = smov 0  }
   0x5   :  { %s1141_s20 = smov 0   ;;  %s1143_s21 = smov 0  }
   0x6   :  { %s1145_s22 = smov 0   ;;  %s1147_s23 = smov 0  }
   0x7 LB: > { %s757_s24 = sadd.s32 4294967295, %s1094_s23   ;;  %s34_s25 = sadd.s32 1, %s1090_s22  ;;  %s1094_s23 = sphi %s1147_s23, %s22_s23   ;;  %s1090_s22 = sphi %s1145_s22, %s1403_s22   ;;  %s1086_s21 = sphi %s1143_s21, %s1402_s21   ;;  %s1082_s20 = sphi %s1141_s20, %s1401_s20   ;;  %s1078_s19 = sphi %s1139_s19, %s1400_s19   ;;  %s1074_s18 = sphi %s1137_s18, %s1399_s18  }
   0x8   : > { %p35_p0 = scmp.ge.s32.totalorder %s34_s25, 2  ;;  %s74_s26 = sadd.s32 1, %s1082_s20 }
   0x9   : > { %p81_p1 = scmp.ne.s32.totalorder %s1082_s20, %s1078_s19  ;;  %p82_p2 = scmp.eq.s32.totalorder %s1094_s23, 0 }
   0xa   : > { %s1405_s25 = smov (%p35_p0, %s34_s25), 0  ;;  %p87_p4 = scmp.ne.s32.totalorder %s1078_s19, %s1074_s18 }
   0xb   : > { %p1173_p3 = por %p82_p2, %p81_p1  ;;  %s71_s28 = ssub.s32 %s1090_s22, %s1405_s25 }
   0xc   : > { %p88_p5 = scmp.eq.s32.totalorder %s757_s24, 0  ;;  %p72_p6 = scmp.eq.s32.totalorder %s71_s28, 0 }
   0xd   : > { %p869_p8 = scmp.lt.s32.totalorder %s1094_s23, 2  ;;  %s1191_s6 = sand.u32 1, %s1082_s20  }
   0xe   : > { %p1182_p7 = por %p88_p5, %p87_p4  ;;  %s763_s7 = sshll.u32 %s1090_s22, 6 }
   0xf   : > { %s1188_s30 = scalar_select %p72_p6, %s1082_s20, %s74_s26  }
  0x10   : > { %s1393_s29 = scalar_select %p1182_p7, 1, 0 }
  0x11   : > { %s762_s8 = sshll.u32 %s1191_s6, 6  ;;  %s1198_s11 = scalar_lea.hbm %s1386_s1, %s763_s7 }
  0x12   : > { %s238_s12 = scalar_lea.vmem [#allocation3], %s762_s8  ;;  %p1204_p9 = pnand %p869_p8, %p1173_p3 }
  0x13   : > { %s244_s13 = sshll.u32 %s238_s12, 4  ;;  %s235_s15 = scalar_lea.sflag [#allocation4], %s1191_s6  ;;  %s1208_s13 = int_to_ptr.vmem [resolvable:$true] %s244_s13 }
  0x14   : > { %s950_s16 = scalar_lea.hbm %s1198_s11, 1024  ;;  %p952_p12 = pneg %p1204_p9 }
  0x15   : > { %p951_p11 = scmp.ne.s32.totalorder %s1198_s11, %s950_s16  ;;  %s955_s26 = scalar_lea.hbm %s1386_s1, 2048 }
  0x16   : > { %p956_p1 = scmp.lt.u32.totalorder %s1198_s11, %s1386_s1  ;;  %p957_p2 = scmp.lt.u32.totalorder %s955_s26, %s950_s16 }
  0x17   : > { %p953_p13 = pnand %p952_p12, %p951_p11  ;;  %p959_p4 = scmp.lt.u32.totalorder %s950_s16, %s1198_s11 }
  0x18   : > { %p958_p3 = por %p957_p2, %p956_p1 }
  0x19   : > { %p954_p0 = pneg %p953_p13 }
  0x1a   : > { %p960_p5 = por %p959_p4, %p958_p3 }
  0x1c   : > { %p961_p6 = pnand %p960_p5, %p954_p0 }
  0x1e   : > { %964 = shalt.err (!%p961_p6)
}
  0x1f   : > { %s965_s7 = scalar_lea.vmem %s1208_s13, 1024  ;;  %s1096_s9 = smov [#allocation3]  }
  0x20   : > { %p966_p8 = scmp.ne.s32.totalorder %s1208_s13, %s965_s7  ;;  %s970_s10 = sshll.u32 %s1096_s9, 4  ;;  %s971_s10 = int_to_ptr.vmem [resolvable:$false] %s970_s10 }
  0x21   : > { %s972_s12 = scalar_lea.vmem %s971_s10, 2048  ;;  %p973_p10 = scmp.lt.s32.totalorder %s1208_s13, %s971_s10 }
  0x22   : > { %p968_p11 = pnand %p966_p8, %p952_p12  ;;  %p974_p1 = scmp.lt.s32.totalorder %s972_s12, %s965_s7 }
  0x24   : > { %p969_p13 = pneg %p968_p11  ;;  %p975_p2 = por %p974_p1, %p973_p10 }
  0x26   : > { %p976_p3 = pnand %p975_p2, %p969_p13 }
  0x28   : > { %979 = shalt.err (!%p976_p3)
}
  0x29   : > { %s1097_s16 = smov 128   ;;  %s1098_s17 = smov 64  }
  0x2a   : > { %s1099_s18 = smov 4   ;;  %p280_p10 = scmp.lt.s32.totalorder %s1094_s23, 3 }
  0x2b   : > { %865 = dma.hbm_to_vmem [thread:$0]  (!%p1204_p9), %s1198_s11, 1024, %s1208_s13, %s235_s15, %s1097_s16, %s1098_s17, %s1099_s18  }
  0x2c   : > { %s795_s26 = sshll.u32 %s1090_s22, 10  ;;  %p1395_p0 = scmp.ge.s32.totalorder %s1094_s23, 1 }
  0x2d   : > { %s1252_s9 = scalar_lea.hbm %s1388_s3, %s795_s26  ;;  %s264_s10 = scalar_lea.vmem [#allocation6], %s762_s8 }
  0x2e   : > { %p1245_p4 = pnand %p1395_p0, %p280_p10  ;;  %s272_s12 = sshll.u32 %s264_s10, 4  ;;  %s1256_s12 = int_to_ptr.vmem [resolvable:$true] %s272_s12 }
  0x2f   : > { %s261_s11 = scalar_lea.sflag [#allocation7], %s1191_s6  ;;  %s980_s13 = scalar_lea.hbm %s1252_s9, 1024 }
  0x30   : > { %p981_p5 = scmp.ne.s32.totalorder %s1252_s9, %s980_s13  ;;  %s985_s26 = scalar_lea.hbm %s1388_s3, 2048 }
  0x31   : > { %p986_p11 = scmp.lt.u32.totalorder %s1252_s9, %s1388_s3  ;;  %p987_p13 = scmp.lt.u32.totalorder %s985_s26, %s980_s13 }
  0x32   : > { %p983_p6 = pnand %p981_p5, %p952_p12  ;;  %p989_p2 = scmp.lt.u32.totalorder %s980_s13, %s1252_s9 }
  0x33   : > { %p988_p1 = por %p987_p13, %p986_p11 }
  0x34   : > { %p984_p8 = pneg %p983_p6 }
  0x35   : > { %p990_p3 = por %p989_p2, %p988_p1 }
  0x37   : > { %p991_p10 = pnand %p990_p3, %p984_p8 }
  0x39   : > { %994 = shalt.err (!%p991_p10)
}
  0x3a   : > { %s995_s8 = scalar_lea.vmem %s1256_s12, 1024  ;;  %s1100_s10 = smov [#allocation6]  }
  0x3b   : > { %p996_p0 = scmp.ne.s32.totalorder %s1256_s12, %s995_s8  ;;  %s1000_s15 = sshll.u32 %s1100_s10, 4  ;;  %s1001_s15 = int_to_ptr.vmem [resolvable:$false] %s1000_s15 }
  0x3c   : > { %s1002_s16 = scalar_lea.vmem %s1001_s15, 2048  ;;  %p1003_p7 = scmp.lt.s32.totalorder %s1256_s12, %s1001_s15 }
  0x3d   : > { %p998_p5 = pnand %p996_p0, %p952_p12  ;;  %p1004_p11 = scmp.lt.s32.totalorder %s1002_s16, %s995_s8 }
  0x3f   : > { %p999_p6 = pneg %p998_p5  ;;  %p1005_p13 = por %p1004_p11, %p1003_p7 }
  0x41   : > { %p1006_p1 = pnand %p1005_p13, %p999_p6 }
  0x43   : > { %1009 = shalt.err (!%p1006_p1)
}
  0x44   : > { %868 = dma.hbm_to_vmem [thread:$0]  (!%p1204_p9), %s1252_s9, 1024, %s1256_s12, %s261_s11, %s1098_s17, %s1098_s17, %s1099_s18  }
  0x45   : > { %284 = sbr.rel (%p1245_p4) target bundleno = 610 (0x262), region = 40  ;;  %s286_s13 = sand.u32 (!%p1245_p4), 1, %s1078_s19  }
  0x46   : > { %s768_s26 = sshll.u32 (!%p1245_p4), %s286_s13, 6  ;;  %s287_s28 = scalar_lea.sflag (!%p1245_p4), [#allocation4], %s286_s13 }
  0x47   : > { %s1290_s7 = scalar_lea.vmem (!%p1245_p4), [#allocation3], %s768_s26  ;;  %p1397_p7 = scmp.ne.s32.totalorder (!%p1245_p4), %s1393_s29, 0 }
  0x4c   : > { %1061 = dma.done.wait (%p1397_p7), %s287_s28, 1024  }
  0x4d   : > { %1063 = vsyncadd (%p1397_p7), %s287_s28, 4294966272  ;;  %s296_s6 = scalar_lea.sflag [#allocation7], %s286_s13  ;;  %s1296_s14 = scalar_lea.vmem [#allocation6], %s768_s26 }
  0x4e   : > { %1065 = dma.done.wait (%p1397_p7), %s296_s6, 1024  }
  0x4f   : > { %1067 = vsyncadd (%p1397_p7), %s296_s6, 4294966272  ;;  %p343_p9 = scmp.lt.s32.totalorder %s1086_s21, 1  ;;  %p770_p12 = scmp.ne.s32.totalorder %s1086_s21, 0 }
  0x50   : > { %v1101_v0 = vmov (!%p770_p12), 0.0  }
  0x51   : > { %s1304_s17 = scalar_select %p343_p9, %s1086_s21, 1 }
  0x52   : > { %355 = sbr.rel (%p770_p12) target bundleno = 89 (0x59), region = 52  ;;  %356 = vst [vmem:[#allocation2] sm:$0xff] (!%p770_p12), %v1101_v0  ;;  %357 = vst [vmem:[#allocation2 + $0x8] sm:$0xff] (!%p770_p12), %v1101_v0 }
  0x53   : > { %s345_s9 = scalar_lea.vmem %s1387_s2, %s1304_s17 }
  0x59 PF: > { %v929_v1 = vld [vmem:[%s1290_s7] sm:$0xff]   ;;  %v1102_v2 = vmov 0.0   ;;  %v930_v3 = vld [vmem:[%s1290_s7 + $0x8] sm:$0xff]   ;;  %vm1103_vm0 = vmmov 0   ;;  %v931_v4 = vld [vmem:[%s1290_s7 + $0x10] sm:$0xff]   ;;  %p789_p4 = scmp.ne.s32.totalorder %s1086_s21, 1 }
  0x5a   : > { %814 = vmatprep.subr.bf16.mxu0 %v1102_v2  ;;  %834 = vmatprep.subr.bf16.mxu1 %v1102_v2  ;;  %v938_v5 = vld [vmem:[%s1296_s14] sm:$0xff]   ;;  %v932_v6 = vld [vmem:[%s1290_s7 + $0x18] sm:$0xff]   ;;  %v939_v7 = vld [vmem:[%s1296_s14 + $0x8] sm:$0xff]  }
  0x5b   : > { %815 = vmatpush3.bf16.msra.mxu0 %v929_v1  ;;  %830 = vmatprep.mubr.msk.bf16.mxu0 %vm1103_vm0, %v1102_v2  ;;  %v933_v8 = vld [vmem:[%s1290_s7 + $0x20] sm:$0xff]   ;;  %v934_v9 = vld [vmem:[%s1290_s7 + $0x28] sm:$0xff]   ;;  %v935_v10 = vld [vmem:[%s1290_s7 + $0x30] sm:$0xff]  }
  0x5c   : > { %816 = vmatprep.subr.bf16.mxu0 %v1102_v2  ;;  %850 = vmatprep.mubr.msk.bf16.mxu1 %vm1103_vm0, %v1102_v2  ;;  %v936_v11 = vld [vmem:[%s1290_s7 + $0x38] sm:$0xff]   ;;  %v937_v12 = vld [vmem:[%s1385_s0] sm:$0xff]   ;;  %v940_v13 = vld [vmem:[%s1296_s14 + $0x10] sm:$0xff]  }
  0x5d   : > { %835 = vmatpush3.bf16.msra.mxu1 %v938_v5  ;;  %v941_v14 = vld [vmem:[%s1296_s14 + $0x18] sm:$0xff]   ;;  %v942_v15 = vld [vmem:[%s1296_s14 + $0x20] sm:$0xff]   ;;  %v943_v16 = vld [vmem:[%s1296_s14 + $0x28] sm:$0xff]  }
  0x5e   : > { %836 = vmatprep.subr.bf16.mxu1 %v1102_v2  ;;  %v944_v17 = vld [vmem:[%s1296_s14 + $0x30] sm:$0xff]   ;;  %v945_v18 = vld [vmem:[%s1296_s14 + $0x38] sm:$0xff]   ;;  %v771_v19 = vld [vmem:[%s345_s9] ss:$0 sm:$0xff] }
  0x5f   : > { %817 = vmatpush3.bf16.msra.mxu0 %v930_v3  ;;  %v488_v37 = vld [vmem:[#allocation2] sm:$0xff]  ;;  %v489_v39 = vld [vmem:[#allocation2 + $0x8] sm:$0xff]  ;;  %v790_v46 = vld [vmem:[%s1389_s4] ss:$0 sm:$0xff] (!%p789_p4) }
  0x60   : > { %818 = vmatprep.subr.bf16.mxu0 %v1102_v2 }
  0x61   : > { %837 = vmatpush3.bf16.msra.mxu1 %v939_v7 }
  0x62   : > { %838 = vmatprep.subr.bf16.mxu1 %v1102_v2 }
  0x63   : > { %819 = vmatpush3.bf16.msra.mxu0 %v931_v4 }
  0x64   : > { %820 = vmatprep.subr.bf16.mxu0 %v1102_v2 }
  0x65   : > { %839 = vmatpush3.bf16.msra.mxu1 %v940_v13 }
  0x66   : > { %840 = vmatprep.subr.bf16.mxu1 %v1102_v2 }
  0x67   : > { %821 = vmatpush3.bf16.msra.mxu0 %v932_v6 }
  0x68   : > { %822 = vmatprep.subr.bf16.mxu0 %v1102_v2 }
  0x69   : > { %841 = vmatpush3.bf16.msra.mxu1 %v941_v14 }
  0x6a   : > { %842 = vmatprep.subr.bf16.mxu1 %v1102_v2 }
  0x6b   : > { %823 = vmatpush3.bf16.msra.mxu0 %v933_v8 }
  0x6c   : > { %824 = vmatprep.subr.bf16.mxu0 %v1102_v2 }
  0x6d   : > { %843 = vmatpush3.bf16.msra.mxu1 %v942_v15 }
  0x6e   : > { %844 = vmatprep.subr.bf16.mxu1 %v1102_v2 }
  0x6f   : > { %825 = vmatpush3.bf16.msra.mxu0 %v934_v9 }
  0x70   : > { %826 = vmatprep.subr.bf16.mxu0 %v1102_v2 }
  0x71   : > { %845 = vmatpush3.bf16.msra.mxu1 %v943_v16 }
  0x72   : > { %846 = vmatprep.subr.bf16.mxu1 %v1102_v2 }
  0x73   : > { %827 = vmatpush3.bf16.msra.mxu0 %v935_v10 }
  0x74   : > { %828 = vmatprep.subr.bf16.mxu0 %v1102_v2 }
  0x75   : > { %847 = vmatpush3.bf16.msra.mxu1 %v944_v17 }
  0x76   : > { %848 = vmatprep.subr.bf16.mxu1 %v1102_v2 }
  0x77   : > { %829 = vmatpush3.bf16.msra.mxu0 %v936_v11 }
  0x79   : > { %849 = vmatpush3.bf16.msra.mxu1 %v945_v18 }
  0x7a   : > { %831 = vmatmul.mubr.bf16.vlgmr.msra.gmra.mrb[0].mxu0 %v937_v12 }
 0x14d   : > { %v471_v20 = vpop.f32.mrb[0].mxu0 }
 0x14e   : > { %v472_v21 = vadd.f32 %v771_v19, %v471_v20  ;;  %v832_v22 = vpop.f32.mrb[1].mxu0 }
 0x14f   : > { %v474_v23 = vpop.f32.mrb[2].mxu0 }
 0x150   : > { %v480_v24 = vmul.f32 0.70710677, %v472_v21  ;;  %v475_v25 = vadd.f32 %v771_v19, %v474_v23  ;;  %v833_v26 = vpop.f32.mrb[3].mxu0  ;;  %v478_v31 = vmul.f32 0.5, %v472_v21 }
 0x152   : > { %946 = verf.f32 %v480_v24  ;;  %v481_v27 = vmul.f32 0.70710677, %v475_v25  ;;  %v479_v32 = vmul.f32 0.5, %v475_v25 }
 0x154   : > { %948 = verf.f32 %v481_v27 }
 0x15c   : > { %v947_v28 = vpop.eup %946 }
 0x15d   : > { %v484_v29 = vadd.f32 1.0, %v947_v28 }
 0x15e   : > { %v949_v30 = vpop.eup %948 }
 0x15f   : > { %v485_v33 = vadd.f32 1.0, %v949_v30  ;;  %v486_v34 = vmul.f32 %v484_v29, %v478_v31 }
 0x161   : > { %v487_v35 = vmul.f32 %v485_v33, %v479_v32 }
 0x163   : > { %v490_v36 = vpack.c.bf16 %v487_v35, %v486_v34 }
 0x165   : > { %851 = vmatmul.mubr.bf16.vlgmr.msra.gmra.mrb[0].mxu1 %v490_v36 }
 0x237   : > { %603 = sbr.rel (%p789_p4) target bundleno = 584 (0x248), region = 56 }
 0x238   : > { %v589_v38 = vpop.f32.mrb[0].mxu1 }
 0x239   : > { %v596_v40 = vadd.f32 %v589_v38, %v488_v37  ;;  %v852_v41 = vpop.f32.mrb[1].mxu1 }
 0x23a   : > { %v592_v42 = vpop.f32.mrb[2].mxu1 }
 0x23b   : > { %598 = vst [vmem:[#allocation2] sm:$0xff] %v596_v40  ;;  %v597_v43 = vadd.f32 %v592_v42, %v489_v39  ;;  %v853_v44 = vpop.f32.mrb[3].mxu1 }
 0x23d   : > { %599 = vst [vmem:[#allocation2 + $0x8] sm:$0xff] %v597_v43 }
 0x242   : > { %v604_v45 = vld [vmem:[#allocation2] sm:$0xff] }
 0x243   : > { %v613_v48 = vadd.f32 %v790_v46, %v604_v45 }
 0x244   : > { %v605_v47 = vld [vmem:[#allocation2 + $0x8] sm:$0xff] }
 0x245   : > { %v614_v49 = vadd.f32 %v790_v46, %v605_v47  ;;  %615 = vst [vmem:[#allocation8] sm:$0xff] %v613_v48 }
 0x247   : > { %616 = vst [vmem:[#allocation8 + $0x8] sm:$0xff] %v614_v49 }
 0x248 PF: > { %p1341_p8 = scmp.eq.s32.totalorder %s757_s24, 1  ;;  %s1104_s21 = smov [#allocation8]  }
 0x249   : > { %s627_s13 = sshll.u32 %s1104_s21, 4  ;;  %s628_s13 = int_to_ptr.vmem [resolvable:$true] %s627_s13 }
 0x24a   : > { %s1010_s26 = scalar_lea.vmem %s628_s13, 256  ;;  %p1017_p0 = scmp.lt.s32.totalorder %s628_s13, %s628_s13 }
 0x24b   : > { %p1011_p2 = scmp.ne.s32.totalorder %s628_s13, %s1010_s26  ;;  %p1018_p5 = scmp.lt.s32.totalorder %s1010_s26, %s1010_s26 }
 0x24d   : > { %p1012_p3 = pnand %p1011_p2, %p1341_p8  ;;  %p1019_p6 = por %p1018_p5, %p1017_p0 }
 0x24f   : > { %p1013_p10 = pneg %p1012_p3 }
 0x251   : > { %p1020_p11 = pnand %p1019_p6, %p1013_p10 }
 0x253   : > { %1023 = shalt.err (!%p1020_p11)
}
 0x254   : > { %s1024_s24 = scalar_lea.hbm %s1390_s5, 256 }
 0x255   : > { %p1025_p13 = scmp.ne.s32.totalorder %s1390_s5, %s1024_s24  ;;  %p1030_p9 = scmp.lt.u32.totalorder %s1024_s24, %s1390_s5 }
 0x257   : > { %p1026_p1 = pnand %p1025_p13, %p1341_p8 }
 0x259   : > { %p1027_p7 = pneg %p1026_p1 }
 0x25b   : > { %p1032_p12 = pnand %p1030_p9, %p1027_p7 }
 0x25d   : > { %1035 = shalt.err (!%p1032_p12)
}
 0x25e   : > { %s1105_s27 = smov 128   ;;  %s1106_s9 = smov 8  }
 0x25f   : > { %859 = dma.vmem_to_hbm [thread:$0]  (%p1341_p8), %s628_s13, 256, %s1390_s5, [#allocation5], %s1105_s27, %s1105_s27, %s1106_s9  }
 0x260   : > { %1069 = dma.done.wait (%p1341_p8), [#allocation5], 256  }
 0x261   : > { %1071 = vsyncadd (%p1341_p8), [#allocation5], 4294967040 }
 0x262 PF: > { %s22_s23 = sadd.s32 1, %s1094_s23   ;;  %s1399_s18 = smov %s1078_s19 }
 0x263   : > { %p19_p4 = scmp.ge.s32.totalorder %s22_s23, 4   ;;  %s1400_s19 = smov %s1082_s20 }
 0x264   : > { %s1401_s20 = smov %s1188_s30  ;;  %s1402_s21 = smov %s1090_s22 }
 0x265   : > { %s1403_s22 = smov %s1405_s25  ;;  %21 = sbr.rel (!%p19_p4) target bundleno = 7 (0x7), region = 108 }
 0x26c   :  { %643 = vsyncpa [#allocation4], 1 }
 0x26d   :  { %645 = vsyncpa [#allocation4 + $0x1], 1 }
 0x26e   :  { %646 = vsyncpa [#allocation7], 1 }
 0x26f   :  { %648 = vsyncpa [#allocation7 + $0x1], 1 }
 0x270   :  { %649 = vsyncpa [#allocation5], 1 }
 0x271   :  { %651 = vsyncpa [#allocation5 + $0x1], 1 }

</bundles_post_ra>
